<compile_context>
chip_gen: v7x
topology: tpu7x:2x2x1
jax: 0.10.0
libtpu: 0.0.40
codegen_flags: <defaults>
</compile_context>

<pallas_src>
import jax
import jax.numpy as jnp
from jax.experimental import pallas as pl
from jax.experimental.pallas import tpu as pltpu


def _round_up(n, m):
    return ((n + m - 1) // m) * m


def _mlp_kernel(x_ref, w1t_ref, b1_ref, w2_ref, b2_ref, o_ref):
    # x_ref  : (tm, D)   input rows for this tile (f32 or bf16)
    # w1t_ref: (D, H)    first Linear weight, pre-transposed, x.dtype
    # b1_ref : (1, H)    first Linear bias (f32)
    # w2_ref : (H, 1)    second Linear weight as a column (f32)
    # b2_ref : (1, 1)    second Linear bias, SMEM scalar (f32)
    # o_ref  : (1, tm)   lane-dense output row for this tile (f32)
    x = x_ref[...]

    # Layer 1 on the MXU: (tm, D) @ (D, H) -> (tm, H).  Both operands are in
    # native (M,K) x (K,N) form, so no XLU transpose of the big x tile.
    h = jnp.dot(x, w1t_ref[...], preferred_element_type=jnp.float32)
    h = jnp.maximum(h + b1_ref[...], 0.0)              # bias broadcast + ReLU (VPU)

    # Move rows onto lanes by transposing the narrow (tm, H) hidden
    # (H = d_model//2 -> half the XLU work of transposing x), then layer 2 on
    # the VPU: multiply by the w2 column and reduce over hidden (sublanes).
    ht = h.T                                            # (H, tm)
    out = jnp.sum(ht * w2_ref[...], axis=0, keepdims=True) + b2_ref[0, 0]

    o_ref[...] = out.astype(o_ref.dtype)                # unmasked, lane-dense store


def solubility_classifier_forward(x, w1, b1, w2, b2, *, tm=None):
    """x: (..., d_model) -> (...,)   [matches SolubilityClassifier.forward]

    Parameters use PyTorch layouts:
      w1: (d_model//2, d_model)   b1: (d_model//2,)
      w2: (1, d_model//2)         b2: (1,)
    Stream x already in bfloat16 (cast at the producer, not here) to halve the
    dominant HBM traffic; accumulation stays f32.  Weights are cast to x.dtype.
    """
    d_model = x.shape[-1]
    hidden = w1.shape[0]
    lead_shape = x.shape[:-1]

    x2d = x.reshape(-1, d_model)                        # glue: flatten leading dims
    m = x2d.shape[0]

    itemsize = x2d.dtype.itemsize
    align = 8 if itemsize >= 4 else (16 if itemsize == 2 else 32)

    # Belt-and-braces pad only when there are fewer rows than one sublane group
    # (at most align-1 extra rows).  No other padding: the last grid block is
    # ragged and its garbage rows are discarded by the final [:m] slice.
    if m < align:
        x2d = jnp.pad(x2d, ((0, align - m), (0, 0)))
    rows = x2d.shape[0]

    # ---- Row-tile selection (HBM-bound; amortize per-grid-step overhead). ----
    d_pad = _round_up(d_model, 128)                     # (tm, D) blocks are lane-padded
    x_buf_budget = 8 << 20                              # double-buffered x; safe under v5e's 16 MiB scoped default
    cap = max(align, ((x_buf_budget // (2 * d_pad * itemsize)) // align) * align)
    max_tm = (rows // align) * align                    # never let a block exceed the array
    if tm is None:
        # >= 4 tiles on medium inputs (feeds both v7x TCs / keeps the pipeline
        # deep), but at least ~1024 rows/tile so the 0.35 us/step stays amortized.
        desired = max(1024, _round_up(pl.cdiv(rows, 4), 128))
    else:
        desired = tm
    tm_eff = _round_up(max(align, min(desired, cap, max_tm)), align)
    num_tiles = pl.cdiv(rows, tm_eff)                   # last block may be ragged

    # ---- Tiny resident params in kernel-friendly layouts. ----
    w1t = jnp.transpose(w1).astype(x2d.dtype)           # (D, H): MXU-native, stream dtype
    b1r = b1.reshape(1, hidden).astype(jnp.float32)     # (1, H)
    w2c = w2.reshape(hidden, 1).astype(jnp.float32)     # (H, 1)  == w2.T
    b2s = b2.reshape(1, 1).astype(jnp.float32)          # (1, 1)  scalar in SMEM

    # ---- Explicit VMEM budget from the padded footprint. ----
    h_pad = _round_up(hidden, 128)
    x_bufs = 2 * tm_eff * d_pad * itemsize              # double-buffered x blocks (lane-padded)
    out_bufs = 2 * 8 * tm_eff * 4                       # (1, tm) f32 blocks, sublane-padded to 8
    hid_tmp = 2 * tm_eff * h_pad * 4                    # (tm, H) hidden + its transpose (upper bound)
    param_bufs = 2 * (d_pad * h_pad * itemsize + 3 * h_pad * 4)
    vmem_limit = int(min(x_bufs + out_bufs + hid_tmp + param_bufs + (8 << 20), 60 << 20))

    out = pl.pallas_call(
        _mlp_kernel,
        out_shape=jax.ShapeDtypeStruct((num_tiles, 1, tm_eff), jnp.float32),
        grid_spec=pltpu.PrefetchScalarGridSpec(
            num_scalar_prefetch=0,
            grid=(num_tiles,),
            in_specs=[
                pl.BlockSpec((tm_eff, d_model), lambda i: (i, 0)),    # x tile (ragged last block)
                pl.BlockSpec((d_model, hidden), lambda i: (0, 0)),    # W1^T (resident)
                pl.BlockSpec((1, hidden), lambda i: (0, 0)),          # b1 row
                pl.BlockSpec((hidden, 1), lambda i: (0, 0)),          # w2 column
                pl.BlockSpec(memory_space=pltpu.MemorySpace.SMEM),    # b2 scalar
            ],
            out_specs=pl.BlockSpec((None, 1, tm_eff), lambda i: (i, 0, 0)),
        ),
        compiler_params=pltpu.CompilerParams(
            dimension_semantics=("parallel",),           # megacore-shardable rows
            vmem_limit_bytes=vmem_limit,
        ),
        # TODO(synk): on v7x, fold 4 logical rows per 128-lane vreg (reshape x
        # (m,32)->(m/4,128) with a 4-way block-diagonal W1) to recover the 4x
        # lane-padding; optionally sweep pipeline_mode=pl.Buffered(3) on the x spec.
    )(x2d, w1t, b1r, w2c, b2s)

    # glue: drop padded/ragged tail rows and restore the leading shape.
    return out.reshape(num_tiles * tm_eff)[:m].reshape(lead_shape)


def init_params(key, d_model):
    """Deterministic synthetic parameters in PyTorch layouts."""
    hidden = d_model // 2
    k1, k2, k3, k4 = jax.random.split(key, 4)
    w1 = jax.random.normal(k1, (hidden, d_model), jnp.float32) * 0.1   # Linear1.weight
    b1 = jax.random.normal(k2, (hidden,), jnp.float32) * 0.1           # Linear1.bias
    w2 = jax.random.normal(k3, (1, hidden), jnp.float32) * 0.1         # Linear2.weight
    b2 = jax.random.normal(k4, (1,), jnp.float32) * 0.1                # Linear2.bias
    return w1, b1, w2, b2


def _ref_forward(x, w1, b1, w2, b2):
    hp = jax.lax.Precision.HIGHEST
    h = jnp.maximum(jnp.einsum("...d,hd->...h", x, w1, precision=hp) + b1, 0.0)
    return (jnp.einsum("...h,oh->...o", h, w2, precision=hp) + b2).squeeze(-1)


if __name__ == "__main__":
    d_model = 32          # config.model.d_model
    batch, seq = 2, 8     # small leading dims; forward supports arbitrary leading dims

    key = jax.random.PRNGKey(0)
    kx, kx2, kx3, kp = jax.random.split(key, 4)
    x = jax.random.normal(kx, (batch, seq, d_model), jnp.float32)
    w1, b1, w2, b2 = init_params(kp, d_model)

    # 1) Small f32 case (single tile; blocks equal the full arrays).
    out = jax.block_until_ready(solubility_classifier_forward(x, w1, b1, w2, b2))
    ref = _ref_forward(x, w1, b1, w2, b2)
    assert out.shape == (batch, seq), out.shape
    assert jnp.allclose(out, ref, atol=1e-4, rtol=1e-4)

    # 2) Explicit-tile path with a ragged (unpadded) last block: 384 rows, tm=256 -> 2 tiles.
    x2 = jax.random.normal(kx2, (4, 96, d_model), jnp.float32)
    out2 = jax.block_until_ready(
        solubility_classifier_forward(x2, w1, b1, w2, b2, tm=256))
    ref2 = _ref_forward(x2, w1, b1, w2, b2)
    assert out2.shape == (4, 96), out2.shape
    assert jnp.allclose(out2, ref2, atol=1e-4, rtol=1e-4)

    # 3) bf16 activation streaming (half the HBM bytes; f32 accumulation), ragged tail.
    xb = x2.astype(jnp.bfloat16)
    out3 = jax.block_until_ready(
        solubility_classifier_forward(xb, w1, b1, w2, b2, tm=256))
    ref3 = _ref_forward(xb.astype(jnp.float32),
                        w1.astype(jnp.bfloat16).astype(jnp.float32), b1, w2, b2)
    assert out3.shape == (4, 96), out3.shape
    assert jnp.allclose(out3, ref3, atol=1e-2, rtol=1e-2)

    # 4) Auto-tiled multi-tile path with a ragged last block (m=4000 -> 4 tiles of 1024).
    x3 = jax.random.normal(kx3, (8, 500, d_model), jnp.float32)
    out4 = jax.block_until_ready(solubility_classifier_forward(x3, w1, b1, w2, b2))
    ref4 = _ref_forward(x3, w1, b1, w2, b2)
    assert out4.shape == (8, 500), out4.shape
    assert jnp.allclose(out4, ref4, atol=1e-4, rtol=1e-4)

    print("KERNEL_OK")
</pallas_src>

<mosaic_0001>
module attributes {stable_mosaic.version = 11 : i64} {
  func.func @_mlp_kernel(%arg0: i32, %arg1: memref<16x32xf32, #tpu.memory_space<vmem>>, %arg2: memref<32x16xf32, #tpu.memory_space<vmem>>, %arg3: memref<1x16xf32, #tpu.memory_space<vmem>>, %arg4: memref<16x1xf32, #tpu.memory_space<vmem>>, %arg5: memref<1x1xf32, #tpu.memory_space<smem>>, %arg6: memref<1x1x16xf32, #tpu.memory_space<vmem>>) attributes {dimension_semantics = [#tpu.dimension_semantics<parallel>], iteration_bounds = array<i64: 1>, scalar_prefetch = 0 : i64, scratch_operands = 0 : i64, tpu.core_type = #tpu.core_type<tc>, window_params = [{transform_indices = @transform_0, window_bounds = array<i64: 16, 32>}, {pipeline_mode = #tpu.pipeline_mode<synchronous>, transform_indices = @transform_1, window_bounds = array<i64: 32, 16>}, {pipeline_mode = #tpu.pipeline_mode<synchronous>, transform_indices = @transform_2, window_bounds = array<i64: 1, 16>}, {pipeline_mode = #tpu.pipeline_mode<synchronous>, transform_indices = @transform_3, window_bounds = array<i64: 16, 1>}, {transform_indices = @transform_4, window_bounds = array<i64: 1, 1>}, {transform_indices = @transform_5, window_bounds = array<i64: 1, 1, 16>}]} {
    %c0 = arith.constant 0 : index
    %c0_0 = arith.constant 0 : index
    %0 = vector.load %arg1[%c0, %c0_0] : memref<16x32xf32, #tpu.memory_space<vmem>>, vector<16x32xf32>
    %c0_1 = arith.constant 0 : index
    %c0_2 = arith.constant 0 : index
    %1 = vector.load %arg2[%c0_1, %c0_2] : memref<32x16xf32, #tpu.memory_space<vmem>>, vector<32x16xf32>
    %cst = arith.constant dense<0.000000e+00> : vector<16x16xf32>
    %2 = tpu.matmul %0, %1, %cst {dimension_numbers = #tpu.dot_dimension_numbers<[1], [0], [0], [1], [0, 0, 1, 1], [], []>} : vector<16x32xf32>, vector<32x16xf32>, vector<16x16xf32> -> vector<16x16xf32>
    %c0_3 = arith.constant 0 : index
    %c0_4 = arith.constant 0 : index
    %3 = vector.load %arg3[%c0_3, %c0_4] : memref<1x16xf32, #tpu.memory_space<vmem>>, vector<1x16xf32>
    %4 = vector.broadcast %3 : vector<1x16xf32> to vector<16x16xf32>
    %5 = arith.addf %2, %4 : vector<16x16xf32>
    %cst_5 = arith.constant 0.000000e+00 : f32
    %6 = vector.broadcast %cst_5 : f32 to vector<16x16xf32>
    %7 = arith.maximumf %5, %6 : vector<16x16xf32>
    %8 = tpu.transpose %7, [1, 0] : vector<16x16xf32> -> vector<16x16xf32>
    %c0_6 = arith.constant 0 : index
    %c0_7 = arith.constant 0 : index
    %9 = vector.load %arg4[%c0_6, %c0_7] : memref<16x1xf32, #tpu.memory_space<vmem>>, vector<16x1xf32>
    %10 = vector.broadcast %9 : vector<16x1xf32> to vector<16x16xf32>
    %11 = arith.mulf %8, %10 : vector<16x16xf32>
    %cst_8 = arith.constant dense<0.000000e+00> : vector<16xf32>
    %12 = vector.multi_reduction <add>, %11, %cst_8 [0] : vector<16x16xf32> to vector<16xf32>
    %13 = vector.shape_cast %12 : vector<16xf32> to vector<1x16xf32>
    %c0_9 = arith.constant 0 : index
    %c0_10 = arith.constant 0 : index
    %14 = memref.load %arg5[%c0_9, %c0_10] : memref<1x1xf32, #tpu.memory_space<smem>>
    %15 = vector.broadcast %14 : f32 to vector<1x16xf32>
    %16 = arith.addf %13, %15 : vector<1x16xf32>
    %c0_11 = arith.constant 0 : index
    %c0_12 = arith.constant 0 : index
    %c0_13 = arith.constant 0 : index
    %17 = vector.load %arg6[%c0_11, %c0_12, %c0_13] : memref<1x1x16xf32, #tpu.memory_space<vmem>>, vector<1x1x16xf32>
    %18 = vector.shape_cast %17 : vector<1x1x16xf32> to vector<1x16xf32>
    %19 = vector.shape_cast %16 : vector<1x16xf32> to vector<1x1x16xf32>
    tpu.vector_store %arg6[%c0_11, %c0_12, %c0_13], %19 {strides = array<i32>} : memref<1x1x16xf32, #tpu.memory_space<vmem>>, vector<1x1x16xf32>,
    return
  }
  func.func @transform_0(%arg0: i32) -> (i32, i32) {
    %c0_i32 = arith.constant 0 : i32
    %c0_i32_0 = arith.constant 0 : i32
    return %arg0, %c0_i32 : i32, i32
  }
  func.func @transform_1(%arg0: i32) -> (i32, i32) {
    %c0_i32 = arith.constant 0 : i32
    %c0_i32_0 = arith.constant 0 : i32
    %c0_i32_1 = arith.constant 0 : i32
    return %c0_i32, %c0_i32_0 : i32, i32
  }
  func.func @transform_2(%arg0: i32) -> (i32, i32) {
    %c0_i32 = arith.constant 0 : i32
    %c0_i32_0 = arith.constant 0 : i32
    %c0_i32_1 = arith.constant 0 : i32
    return %c0_i32, %c0_i32_0 : i32, i32
  }
  func.func @transform_3(%arg0: i32) -> (i32, i32) {
    %c0_i32 = arith.constant 0 : i32
    %c0_i32_0 = arith.constant 0 : i32
    %c0_i32_1 = arith.constant 0 : i32
    return %c0_i32, %c0_i32_0 : i32, i32
  }
  func.func @transform_4(%arg0: i32) -> (i32, i32) {
    %c0_i32 = arith.constant 0 : i32
    %c0_i32_0 = arith.constant 0 : i32
    %c0_i32_1 = arith.constant 0 : i32
    return %c0_i32, %c0_i32_0 : i32, i32
  }
  func.func @transform_5(%arg0: i32) -> (i32, i32, i32) {
    %c0_i32 = arith.constant 0 : i32
    %c0_i32_0 = arith.constant 0 : i32
    %c0_i32_1 = arith.constant 0 : i32
    return %arg0, %c0_i32, %c0_i32_0 : i32, i32, i32
  }
}

</mosaic_0001>

<bundles_post_ra>
// kernel: tpu_custom_call.1
= control target key start
LH: loop header
LB: loop body
LE: loop exit
PB: predicated region body
PF: predicated region fallthrough
CT: control target
= control target key end

     0   :  { %vm35_vm0 = vcmask 261120   ;;  %s324_s0 = inlined_call_operand.vmem [shape: f32[16,32], index: 0, kind: input, shape index: {}]   ;;  %s325_s1 = inlined_call_operand.vmem [shape: f32[32,16], index: 1, kind: input, shape index: {}]   ;;  %s326_s2 = inlined_call_operand.vmem [shape: f32[1,16], index: 2, kind: input, shape index: {}]   ;;  %s327_s3 = inlined_call_operand.vmem [shape: f32[16,1], index: 3, kind: input, shape index: {}]   ;;  %s328_s4 = inlined_call_operand.<no memory space> [shape: f32[1,1], index: 4, kind: input, shape index: {}]   ;;  %s329_s5 = inlined_call_operand.hbm [shape: f32[1,1,16], index: 5, kind: output, shape index: {}]  }
   0x1   :  { %v24_v0 = vld [vmem:[%s325_s1] sm:$0xff]  ;;  %v25_v1 = vld [vmem:[%s325_s1 + $0x8] sm:$0xff]  ;;  %v26_v2 = vld [vmem:[%s325_s1 + $0x10] sm:$0xff] }
   0x2   :  { %v214_v3 = vpack.c.bf16 %v25_v1, %v24_v0  ;;  %v27_v4 = vld [vmem:[%s325_s1 + $0x18] sm:$0xff]  ;;  %v22_v5 = vld [vmem:[%s324_s0] sm:$0xff] }
   0x3   :  { %v218_v6 = vpack.c.bf16 %v27_v4, %v26_v2  ;;  %211 = vmatprep.mubr.msk.f32.mxu0 %vm35_vm0, %v22_v5 }
   0x4   :  { %11 = vsyncpa [#allocation4], 0  ;;  %215 = vmatprep.subr.bf16.mxu0 %v214_v3  ;;  %v23_v7 = vld [vmem:[%s324_s0 + $0x8] sm:$0xff]  ;;  %v250_v8 = vmov 0   ;;  %v151_v9 = vld [vmem:[%s327_s3] sm:$0xff]  ;;  %vm165_vm1 = vcmask 130048   ;;  %v176_v32 = vstv %s328_s4 }
   0x5   :  { %217 = vmatpush3.bf16.msra.mxu0 %v214_v3  ;;  %225 = vset.pattern.permute.xlu0 %v250_v8  ;;  %v152_v10 = vld [vmem:[%s327_s3 + $0x8] sm:$0xff]  ;;  %v194_v11 = vld [vmem:[%s326_s2] ss:$0 sm:$0xff]  ;;  %s251_s3 = smov [#allocation3]   ;;  %vm178_vm2 = vcmask 122880  }
   0x6   :  { %219 = vmatprep.subr.bf16.mxu0 %v218_v6  ;;  %155 = vperm.xlu0 %225, %v151_v9   ;;  %s186_s10 = sshll.u32 %s251_s3, 4  ;;  %s187_s10 = int_to_ptr.vmem [resolvable:$true] %s186_s10 }
   0x7   :  { %s226_s11 = scalar_lea.vmem %s187_s10, 16  ;;  %s230_s12 = scalar_lea.vmem %s187_s10, 32 }
   0x8   :  { %p227_p0 = scmp.ne.s32.totalorder %s187_s10, %s226_s11  ;;  %p231_p1 = scmp.lt.s32.totalorder %s187_s10, %s187_s10 }
   0x9   :  { %221 = vmatpush3.bf16.msra.mxu0 %v218_v6  ;;  %p232_p2 = scmp.lt.s32.totalorder %s230_s12, %s226_s11 }
   0xa   :  { %160 = vperm.xlu0 %225, %v152_v10  }
   0xb   :  { %p233_p3 = por %p232_p2, %p231_p1 }
   0xc   :  { %212 = vmatmul.mubr.msk.f32.vlgmr.msra.gmra.mrb[0].mxu0 %vm35_vm0, %v23_v7 }
   0xd   :  { %p234_p4 = pnand %p233_p3, %p227_p0 }
  0x85   :  { %v156_v18 = vpop.permute.xlu0 %155 }
  0x89   :  { %v161_v21 = vpop.permute.xlu0 %160 }
  0xdf   :  { %v213_v12 = vpop.f32.mrb[0].mxu0 }
  0xe0   :  { %v108_v13 = vpop.f32.mrb[1].mxu0  ;;  %v114_v15 = vadd.f32 %v213_v12, %v194_v11 }
  0xe1   :  { %v109_v14 = vadd.f32 %v194_v11, %v108_v13 }
  0xe2   :  { %v118_v17 = vmax.f32 %v114_v15, 0.0 }
  0xe3   :  { %v117_v16 = vmax.f32 %v109_v14, 0.0 }
  0xe5   :  { %119 = vxpose.xlu1.b32.start [1/2] (short) (narrow) %v117_v16, 16 }
  0xe9   :  { %120 = vxpose.xlu1.b32.end [2/2] (short) (narrow) %v118_v17, 16 }
 0x165   :  { %v135_v19 = vpop.trf.xlu1 }
 0x166   :  { %v163_v20 = vmul.f32 %v156_v18, %v135_v19 }
 0x168   :  { %v166_v24 = vsel %vm165_vm1, %v163_v20, 0.0 }
 0x169   :  { %v136_v22 = vpop.trf.xlu1 }
 0x16a   :  { %v164_v23 = vmul.f32 %v161_v21, %v136_v22 }
 0x16c   :  { %v167_v25 = vsel %vm165_vm1, %v164_v23, 0.0 }
 0x16d   :  { %v168_v26 = vadd.f32 %v167_v25, %v166_v24 }
 0x16f   :  { %v169_v27 = vrot.slane %v168_v26, 4 }
 0x171   :  { %v170_v28 = vadd.f32 %v169_v27, %v168_v26 }
 0x173   :  { %v171_v29 = vrot.slane %v170_v28, 2 }
 0x175   :  { %v172_v30 = vadd.f32 %v171_v29, %v170_v28 }
 0x177   :  { %v173_v31 = vrot.slane %v172_v30, 1 }
 0x179   :  { %v174_v33 = vadd.f32 %v173_v31, %v172_v30 }
 0x17b   :  { %v177_v34 = vadd.f32 %v176_v32, %v174_v33 }
 0x17d   :  { %179 = vst.msk [vmem:[#allocation3] sm:$0x1] %vm178_vm2, %v177_v34 }
 0x17e   :  { %237 = shalt.err (!%p234_p4)
}
 0x17f   :  { %s238_s15 = scalar_lea.hbm %s329_s5, 16 }
 0x180   :  { %p239_p5 = scmp.ne.s32.totalorder %s329_s5, %s238_s15  ;;  %p242_p6 = scmp.lt.u32.totalorder %s238_s15, %s329_s5 }
 0x182   :  { %p244_p7 = pnand %p242_p6, %p239_p5 }
 0x184   :  { %247 = shalt.err (!%p244_p7)
}
 0x185   :  { %189 = dma.vmem_to_hbm [thread:$0]  %s187_s10, 16, %s329_s5, [#allocation4]  }
 0x186   :  { %248 = dma.done.wait [#allocation4], 16  }
 0x187   :  { %249 = vsyncadd [#allocation4], 4294967280 }
 0x188   :  { %193 = vsyncpa [#allocation4], 1 }

</bundles_post_ra>
